<compile_context>
chip_gen: v7x
topology: tpu7x:2x2x1
jax: 0.10.0
libtpu: 0.0.40
codegen_flags: <defaults>
</compile_context>

<pallas_src>
import functools
import math

import jax
import jax.numpy as jnp
from jax import lax
from jax.experimental import pallas as pl
from jax.experimental.pallas import tpu as pltpu


def _cdiv(a, b):
    return -(-a // b)


def _round_up(a, m):
    return _cdiv(a, m) * m


def _pos_emb_kernel(seed_ref, table_ref, out_ref, *, scale, drop_p, fold, dim):
    """table_ref: (tsf, df) folded positional-table rows for this seq block.
    out_ref:   (tb, tsf, df) output block (tb batch rows x tsf folded row-positions)."""
    tab = table_ref[...].astype(jnp.float32)                 # (tsf, df)
    tb, tsf, df = out_ref.shape

    if drop_p <= 0.0:
        # Eval / p == 0: pure scaled copy (batch handled outside the kernel).
        out = jnp.broadcast_to(tab[None] * scale, out_ref.shape)
        out_ref[...] = out.astype(out_ref.dtype)
        return

    if drop_p >= 1.0:
        out_ref[...] = jnp.zeros(out_ref.shape, out_ref.dtype)
        return

    # ---- Dropout1d: one keep/drop decision per (batch, sequence position). ----
    # Hash once per row: with fold == 1 a row is a single position, so hash on a
    # (tb, tsf, 1) shape and broadcast the mask across the feature lanes (DF/128x
    # less VALU work).  With fold > 1 a row packs `fold` positions into 128 lanes,
    # so the (tb, tsf, 128) shape is already the minimal hash footprint.
    hs = (tb, tsf, df) if fold > 1 else (tb, tsf, 1)
    b_i = pl.program_id(0) * tb + lax.broadcasted_iota(jnp.int32, hs, 0)
    row = pl.program_id(1) * tsf + lax.broadcasted_iota(jnp.int32, hs, 1)
    pos = row * fold
    if fold > 1:
        # fold > 1 only when 128 % dim == 0 => dim is a power of two.
        l_i = lax.broadcasted_iota(jnp.int32, hs, 2)
        pos = pos + (l_i >> (dim.bit_length() - 1))

    # Counter-based ARX hash keyed on (seed, batch, position): tile-size independent,
    # identical across all feature lanes of a row -> whole rows kept/dropped together.
    seed_u = seed_ref[0].astype(jnp.uint32)
    x = pos.astype(jnp.uint32) + jnp.uint32(0x9E3779B9)
    y = b_i.astype(jnp.uint32) ^ (seed_u + jnp.uint32(0xBB67AE85))
    for r in (13, 17, 26, 6, 21):                             # 5 ARX mixing rounds
        x = x + y
        y = ((y << r) | (y >> (32 - r))) ^ x
    h = (x ^ y) >> 8                                          # 24 uniform bits per row

    # Integer-domain threshold; survivor scale folded into one constant.
    thresh = int(round(drop_p * (1 << 24)))
    keep_f = (h.astype(jnp.int32) >= thresh).astype(jnp.float32) * (scale / (1.0 - drop_p))
    out = tab[None] * keep_f                                  # mask broadcast over lanes
    out_ref[...] = out.astype(out_ref.dtype)


def positional_embedding(table, batch, seq_len, *, scale=1.0, drop_p=0.0, seed=0,
                         out_dtype=jnp.float32,
                         vmem_working_set_bytes=24 * 1024 * 1024):
    """dropout1d(pos_table[arange(seq_len)] * scale), broadcast over `batch`.

    `table` is the (max_length, D) positional table (learned weights or the sinusoidal
    buffer). Returns a (batch, seq_len, D) array in `out_dtype`.
    """
    max_len, dim = table.shape
    if seq_len > max_len:
        raise ValueError(f"seq_len={seq_len} exceeds max_length={max_len}")

    drop_p = float(drop_p)
    training_drop = drop_p > 0.0

    # Lane-dense folding: pack `fold` consecutive positions into one row so the
    # kernel's last dim is a multiple of 128 (unmasked full-lane stores).
    fold = 1
    if dim < 128 and 128 % dim == 0:
        f = 128 // dim
        if seq_len % f == 0 and max_len % f == 0:
            fold = f
    # TODO(synk): when dim < 128 and does not divide 128 the last dim stays < 128 and
    # stores are lane-masked (legal, just slower); no clean folding exists there.
    sf, df = seq_len // fold, dim * fold
    table_f = table.reshape(max_len // fold, df)

    out_itemsize = jnp.dtype(out_dtype).itemsize
    tab_itemsize = jnp.dtype(table.dtype).itemsize
    row_mult = 16 if out_itemsize <= 2 else 8                # sublane multiple per out dtype

    # Eval fast path: p == 0 -> all batch rows identical; compute one copy in the
    # kernel and broadcast over batch outside (fuses into consumers under jit).
    batch_eff = batch if training_drop else 1

    # --- Tile selection: budget the double-buffered working set -------------------
    budget = vmem_working_set_bytes // 2                     # out block + table block
    per_row_tab = df * tab_itemsize
    per_row_out = df * out_itemsize
    min_rows = min(row_mult, sf)

    # Batch block: largest tb whose minimal (min_rows) block still fits the budget.
    if budget > min_rows * (per_row_tab + per_row_out):
        tb = min(batch_eff, (budget - min_rows * per_row_tab) // (min_rows * per_row_out))
    else:
        tb = 1
    tb = max(1, int(tb))

    # Seq block: largest multiple of row_mult under the budget, capped at the
    # (rounded-up) folded sequence length; ragged last block handled by the cdiv grid.
    if sf <= row_mult:
        tsf = sf
    else:
        tsf = budget // (per_row_tab + tb * per_row_out)
        tsf = min(int(tsf), _round_up(sf, row_mult))
        tsf = max(row_mult, (tsf // row_mult) * row_mult)

    nb = _cdiv(batch_eff, tb)
    ns = _cdiv(sf, tsf)

    # Ensure >= 2 grid steps so v7x's two TensorCores both get write traffic.
    if nb * ns < 2:
        if batch_eff >= 2:
            tb = _cdiv(batch_eff, 2)
            nb = _cdiv(batch_eff, tb)
        elif sf > row_mult:
            tsf = max(row_mult, _round_up(_cdiv(sf, 2), row_mult))
            ns = _cdiv(sf, tsf)

    # Tiny/odd sequences (tsf not a multiple of 8): block must equal the full array
    # dims, so slice the table to exactly the used rows.
    if tsf % 8 != 0:
        table_f = table_f[:sf]

    working_set = 2 * (tb * tsf * df * out_itemsize + tsf * df * tab_itemsize)
    vmem_limit = int(min(48 * 1024 * 1024,
                         max(32 * 1024 * 1024, working_set + 4 * 1024 * 1024)))

    kernel = functools.partial(_pos_emb_kernel, scale=float(scale), drop_p=drop_p,
                               fold=fold, dim=dim)
    seed_arr = jnp.asarray([seed], dtype=jnp.int32)

    out_f = pl.pallas_call(
        kernel,
        out_shape=jax.ShapeDtypeStruct((batch_eff, sf, df), out_dtype),
        grid_spec=pltpu.PrefetchScalarGridSpec(
            num_scalar_prefetch=1,
            grid=(nb, ns),
            # positions[b, s] == s, so the seq-block index directly selects the
            # (folded) table rows -- the embedding "gather".
            in_specs=[pl.BlockSpec((tsf, df), lambda b, s, _seed: (s, 0))],
            out_specs=pl.BlockSpec((tb, tsf, df), lambda b, s, _seed: (b, s, 0)),
        ),
        compiler_params=pltpu.CompilerParams(
            dimension_semantics=("parallel", "parallel"),
            vmem_limit_bytes=vmem_limit,
        ),
    )(seed_arr, table_f)

    out = out_f.reshape(batch_eff, seq_len, dim)             # free contiguous un-fold
    if batch_eff != batch:
        out = jnp.broadcast_to(out, (batch, seq_len, dim))
    return out


if __name__ == "__main__":
    key = jax.random.PRNGKey(0)
    w_key, w2_key = jax.random.split(key)

    B, S, D, MAX_LEN = 2, 8, 32, 64

    # learned: nn.Embedding(MAX_LEN, D) with normal(0, D^-0.5) init, output scale sqrt(D)
    learned_table = jax.random.normal(w_key, (MAX_LEN, D), jnp.float32) * (D ** -0.5)

    # sinusoidal: fixed sin/cos buffer, scale 1.0
    position = jnp.arange(MAX_LEN, dtype=jnp.float32)[:, None]
    div_term = jnp.exp(jnp.arange(0, D, 2, dtype=jnp.float32) * (-math.log(10000.0) / D))
    pe = jnp.zeros((MAX_LEN, D), jnp.float32)
    pe = pe.at[:, 0::2].set(jnp.sin(position * div_term))
    pe = pe.at[:, 1::2].set(jnp.cos(position * div_term))

    # 1) learned positional embedding, dropout p = 0 (eval / identity dropout)
    out_learned = positional_embedding(learned_table, B, S,
                                       scale=float(D) ** 0.5, drop_p=0.0)
    jax.block_until_ready(out_learned)
    ref = jnp.broadcast_to(learned_table[:S][None], (B, S, D)) * (float(D) ** 0.5)
    assert out_learned.shape == (B, S, D)
    assert jnp.allclose(out_learned, ref, atol=1e-5)

    # 2) sinusoidal positional embedding, dropout p = 0.5 (training semantics)
    p = 0.5
    out_sin = positional_embedding(pe, B, S, scale=1.0, drop_p=p, seed=1234)
    jax.block_until_ready(out_sin)
    assert out_sin.shape == (B, S, D)
    # Dropout1d structure: every (b, s) row is either all-zero or pe[s] / (1 - p).
    kept = jnp.all(jnp.isclose(out_sin, pe[:S][None] / (1.0 - p), atol=1e-5), axis=-1)
    dropped = jnp.all(jnp.abs(out_sin) < 1e-6, axis=-1)
    assert bool(jnp.all(kept | dropped))

    # 3) longer sequence exercising multiple grid steps + ragged last seq block
    S_BIG = 56
    out_big = positional_embedding(pe, B, S_BIG, scale=1.0, drop_p=0.0)
    jax.block_until_ready(out_big)
    ref_big = jnp.broadcast_to(pe[:S_BIG][None], (B, S_BIG, D))
    assert out_big.shape == (B, S_BIG, D)
    assert jnp.allclose(out_big, ref_big, atol=1e-5)

    # 4) wide embedding (fold == 1, per-row hash) + batch grid axis, dropout p = 0.25
    B2, S2, D2, MAX_LEN2, p2 = 4, 24, 256, 32, 0.25
    table2 = jax.random.normal(w2_key, (MAX_LEN2, D2), jnp.float32) * (D2 ** -0.5)
    out2 = positional_embedding(table2, B2, S2, scale=float(D2) ** 0.5,
                                drop_p=p2, seed=7)
    jax.block_until_ready(out2)
    assert out2.shape == (B2, S2, D2)
    ref_rows2 = table2[:S2][None] * (float(D2) ** 0.5) / (1.0 - p2)
    kept2 = jnp.all(jnp.isclose(out2, ref_rows2, atol=1e-4), axis=-1)
    dropped2 = jnp.all(jnp.abs(out2) < 1e-6, axis=-1)
    assert bool(jnp.all(kept2 | dropped2))
    keep_frac = float(jnp.mean(kept2.astype(jnp.float32)))
    assert 0.45 < keep_frac < 0.95  # ~Bernoulli(0.75) per row

    # TODO(synk): torch's Dropout1d draws from torch's RNG; the in-kernel counter-based
    # hash is distributionally equivalent (Bernoulli(1-p) per (b, s) row) but not
    # bit-identical to torch.
    print("KERNEL_OK")
</pallas_src>

<mosaic_0001>
module attributes {stable_mosaic.version = 11 : i64} {
  func.func @_pos_emb_kernel(%arg0: i32, %arg1: i32, %arg2: memref<1xi32, #tpu.memory_space<smem>>, %arg3: memref<2x128xf32, #tpu.memory_space<vmem>>, %arg4: memref<1x2x128xf32, #tpu.memory_space<vmem>>) attributes {dimension_semantics = [#tpu.dimension_semantics<parallel>, #tpu.dimension_semantics<parallel>], iteration_bounds = array<i64: 1, 1>, scalar_prefetch = 1 : i64, scratch_operands = 0 : i64, tpu.core_type = #tpu.core_type<tc>, window_params = [{transform_indices = @transform_0, window_bounds = array<i64: 2, 128>}, {transform_indices = @transform_1, window_bounds = array<i64: 1, 2, 128>}]} {
    %c0 = arith.constant 0 : index
    %c0_0 = arith.constant 0 : index
    %0 = vector.load %arg3[%c0, %c0_0] : memref<2x128xf32, #tpu.memory_space<vmem>>, vector<2x128xf32>
    %1 = vector.shape_cast %0 : vector<2x128xf32> to vector<1x2x128xf32>
    %cst = arith.constant 5.65685415 : f32
    %2 = vector.broadcast %cst : f32 to vector<1x2x128xf32>
    %3 = arith.mulf %1, %2 : vector<1x2x128xf32>
    %c0_1 = arith.constant 0 : index
    %c0_2 = arith.constant 0 : index
    %c0_3 = arith.constant 0 : index
    %4 = vector.load %arg4[%c0_1, %c0_2, %c0_3] : memref<1x2x128xf32, #tpu.memory_space<vmem>>, vector<1x2x128xf32>
    tpu.vector_store %arg4[%c0_1, %c0_2, %c0_3], %3 {strides = array<i32>} : memref<1x2x128xf32, #tpu.memory_space<vmem>>, vector<1x2x128xf32>,
    return
  }
  func.func @transform_0(%arg0: i32, %arg1: i32, %arg2: memref<1xi32, #tpu.memory_space<smem>>) -> (i32, i32) {
    %c0_i32 = arith.constant 0 : i32
    %c0_i32_0 = arith.constant 0 : i32
    return %arg1, %c0_i32 : i32, i32
  }
  func.func @transform_1(%arg0: i32, %arg1: i32, %arg2: memref<1xi32, #tpu.memory_space<smem>>) -> (i32, i32, i32) {
    %c0_i32 = arith.constant 0 : i32
    %c0_i32_0 = arith.constant 0 : i32
    return %arg0, %arg1, %c0_i32 : i32, i32, i32
  }
}

</mosaic_0001>

<bundles_post_ra>
// kernel: tpu_custom_call.1
= control target key start
LH: loop header
LB: loop body
LE: loop exit
PB: predicated region body
PF: predicated region fallthrough
CT: control target
= control target key end

     0   :  { %s84_s0 = inlined_call_operand.<no memory space> [shape: s32[1], index: 0, kind: input, shape index: {}]   ;;  %s85_s1 = inlined_call_operand.vmem [shape: f32[2,128], index: 1, kind: input, shape index: {}]   ;;  %s86_s2 = inlined_call_operand.hbm [shape: f32[1,2,128], index: 2, kind: output, shape index: {}]  }
   0x1   :  { %v11_v0 = vld [vmem:[%s85_s1] sm:$0x3] }
   0x2   :  { %8 = vsyncpa [#allocation5], 0  ;;  %v12_v1 = vmul.f32 5.656854, %v11_v0  ;;  %s53_s11 = smov [#allocation4]  }
   0x3   :  { %s20_s12 = sshll.u32 %s53_s11, 4  ;;  %s21_s12 = int_to_ptr.vmem [resolvable:$true] %s20_s12 }
   0x4   :  { %13 = vst [vmem:[#allocation4] sm:$0x3] %v12_v1  ;;  %s29_s13 = scalar_lea.vmem %s21_s12, 32  ;;  %p34_p1 = scmp.lt.s32.totalorder %s21_s12, %s21_s12 }
   0x5   :  { %p30_p0 = scmp.ne.s32.totalorder %s21_s12, %s29_s13  ;;  %p35_p2 = scmp.lt.s32.totalorder %s29_s13, %s29_s13 }
   0x7   :  { %p36_p3 = por %p35_p2, %p34_p1 }
   0x9   :  { %p37_p4 = pnand %p36_p3, %p30_p0 }
   0xb   :  { %40 = shalt.err (!%p37_p4)
}
   0xc   :  { %s41_s15 = scalar_lea.hbm %s86_s2, 32 }
   0xd   :  { %p42_p5 = scmp.ne.s32.totalorder %s86_s2, %s41_s15  ;;  %p45_p6 = scmp.lt.u32.totalorder %s41_s15, %s86_s2 }
   0xf   :  { %p47_p7 = pnand %p45_p6, %p42_p5 }
  0x11   :  { %50 = shalt.err (!%p47_p7)
}
  0x12   :  { %23 = dma.vmem_to_hbm [thread:$0]  %s21_s12, 32, %s86_s2, [#allocation5]  }
  0x13   :  { %51 = dma.done.wait [#allocation5], 32  }
  0x14   :  { %52 = vsyncadd [#allocation5], 4294967264 }
  0x15   :  { %27 = vsyncpa [#allocation5], 1 }

</bundles_post_ra>
